<compile_context>
chip_gen: v5e
topology: v5e:2x2
jax: 0.10.0
libtpu: 0.0.40
codegen_flags: <defaults>
</compile_context>

<pallas_src>
import math

import jax
import jax.numpy as jnp
from jax.experimental import pallas as pl
from jax.experimental.pallas import tpu as pltpu


def _round_up(x, m):
    return ((x + m - 1) // m) * m


def _single_buffered(block_shape, index_map):
    """BlockSpec for grid-invariant (resident) blocks: no need for double buffering."""
    if hasattr(pl, "Buffered"):
        try:
            return pl.BlockSpec(block_shape, index_map, pipeline_mode=pl.Buffered(1))
        except Exception:  # older BlockSpec signature / buffer_count restriction
            pass
    return pl.BlockSpec(block_shape, index_map)


def _make_kernel(tile_n, tile_k, features_resident, compute_dtype):
    """Builds the kernel body; two variants depending on whether features are resident."""

    def _accumulate(k, adj_ref, fcols, neigh_acc):
        @pl.when(k == 0)
        def _():
            neigh_acc[...] = jnp.zeros_like(neigh_acc)

        # int8 {0,1} mask -> compute dtype (cheap VPU cast vs. the HBM bytes it saves).
        adj = adj_ref[...].astype(jnp.float32).astype(compute_dtype)
        neigh_acc[...] += jnp.dot(adj, fcols, preferred_element_type=jnp.float32)

    def _finalize(k, frows_fn, inv_deg_ref, w12t_ref, out_ref, neigh_acc):
        @pl.when(k == pl.num_programs(1) - 1)
        def _():
            # mean = (sum over neighbors) * (1/deg), scaled in f32 before the cast.
            neigh = (neigh_acc[...] * inv_deg_ref[...]).astype(compute_dtype)
            # One fused MXU matmul with K = 2*f_pad (instead of two half-depth dots).
            combined = jnp.concatenate([frows_fn(), neigh], axis=-1)
            out = jnp.dot(combined, w12t_ref[...], preferred_element_type=jnp.float32)
            out_ref[...] = jnp.maximum(out, 0.0).astype(out_ref.dtype)

    if features_resident:
        def kernel(adj_ref, feat_ref, inv_deg_ref, w12t_ref, out_ref, neigh_acc):
            i, k = pl.program_id(0), pl.program_id(1)
            col0 = pl.multiple_of(k * tile_k, tile_k)
            _accumulate(k, adj_ref, feat_ref[pl.ds(col0, tile_k), :], neigh_acc)

            def frows():
                row0 = pl.multiple_of(i * tile_n, tile_n)
                return feat_ref[pl.ds(row0, tile_n), :]

            _finalize(k, frows, inv_deg_ref, w12t_ref, out_ref, neigh_acc)
    else:
        def kernel(adj_ref, feat_rows_ref, feat_cols_ref, inv_deg_ref, w12t_ref,
                   out_ref, neigh_acc):
            k = pl.program_id(1)
            _accumulate(k, adj_ref, feat_cols_ref[...], neigh_acc)
            _finalize(k, lambda: feat_rows_ref[...], inv_deg_ref, w12t_ref,
                      out_ref, neigh_acc)

    return kernel


def encoder_forward(adj_mask, features, weight, *,
                    tile_n=512, tile_k=1024,
                    compute_dtype=jnp.bfloat16, out_dtype=jnp.float32,
                    features_resident=None,
                    vmem_budget_bytes=28 * 1024 * 1024,
                    transpose_output=True):
    """GraphSage "convolutional" encoder forward.

    adj_mask : [N, N] binary/float neighbor mask (nonzero => edge). Mean aggregation
               is (mask @ features) * (1/deg) with deg = row-sum of the mask.
    features : [N, F]
    weight   : [E, 2F]   (gcn=False path of the PyTorch Encoder)
    returns  : [E, N]  (= relu(W @ cat([feat, neigh], 1).T)) when transpose_output,
               else node-major [N, E] (skips the extra transpose pass).
    """
    N, F = features.shape
    E, two_f = weight.shape
    assert two_f == 2 * F, "gcn=False path expects weight of shape [embed_dim, 2*feat_dim]"

    f_pad = _round_up(F, 128)
    e_pad = _round_up(E, 128)
    n128 = _round_up(N, 128)
    cbytes = jnp.dtype(compute_dtype).itemsize
    obytes = jnp.dtype(out_dtype).itemsize

    # 128-aligned tiles, clamped to the (padded) problem size.
    tile_n = max(128, min(_round_up(tile_n, 128), n128))
    tile_k = max(128, min(_round_up(tile_k, 128), n128))

    def n_padded(tn, tk):
        return _round_up(N, math.lcm(tn, tk))

    def footprint(tn, tk, resident):
        npad = n_padded(tn, tk)
        adj = 2 * tn * tk                                   # int8 mask, double-buffered
        feat = (npad * f_pad * cbytes if resident           # resident slab (single copy)
                else 2 * (tn + tk) * f_pad * cbytes)        # streamed row/col tiles
        w = 2 * f_pad * e_pad * cbytes                      # fused [W1^T; W2^T], resident
        inv = 2 * tn * 4
        out = 2 * tn * e_pad * obytes
        acc = tn * f_pad * 4
        return adj + feat + w + inv + out + acc

    # Keep features resident in VMEM when they fit comfortably (removes the
    # (n_pad/tile_n)-fold feature re-stream); otherwise stream column tiles.
    if features_resident is None:
        features_resident = n128 * f_pad * cbytes <= vmem_budget_bytes // 2

    # Explicit VMEM budget (v7x: 64 MiB physical / 32 MiB scoped per TC).
    while footprint(tile_n, tile_k, features_resident) > vmem_budget_bytes:
        if tile_k > 128:
            tile_k = max(128, _round_up(tile_k // 2, 128))
        elif tile_n > 128:
            tile_n = max(128, _round_up(tile_n // 2, 128))
        elif features_resident:
            features_resident = False
        else:
            break

    n_pad = n_padded(tile_n, tile_k)

    # Prefer >= 2 row blocks so dimension_semantics=("parallel", ...) can split the
    # node axis across v7x's two TensorCores.
    if n_pad // tile_n < 2 and (n_pad // 2) % 128 == 0:
        tile_n = n_pad // 2

    # --- Wrapper-side prep: cast first, pad second (never an f32 [N,N] copy). ---
    mask = (adj_mask != 0)
    adj_p = jnp.pad(mask.astype(jnp.int8), ((0, n_pad - N), (0, n_pad - N)))
    deg = jnp.sum(mask, axis=1).astype(jnp.float32)
    inv_deg = jnp.where(deg > 0.0, 1.0 / jnp.maximum(deg, 1.0), 0.0)
    inv_p = jnp.pad(inv_deg, (0, n_pad - N)).reshape(n_pad, 1)
    feat_p = jnp.pad(features.astype(compute_dtype), ((0, n_pad - N), (0, f_pad - F)))
    # Split + transpose + stack the weight once: relu((cat @ [W1^T; W2^T])) == relu(W @ cat^T)^T.
    wc = weight.astype(compute_dtype)
    w1t = jnp.pad(wc[:, :F].T, ((0, f_pad - F), (0, e_pad - E)))
    w2t = jnp.pad(wc[:, F:].T, ((0, f_pad - F), (0, e_pad - E)))
    w12t = jnp.concatenate([w1t, w2t], axis=0)               # [2*f_pad, e_pad]

    grid = (n_pad // tile_n, n_pad // tile_k)
    n_i = grid[0]

    adj_spec = pl.BlockSpec((tile_n, tile_k), lambda i, k: (i, k))
    inv_spec = pl.BlockSpec((tile_n, 1), lambda i, k: (i, 0))
    w_spec = _single_buffered((2 * f_pad, e_pad), lambda i, k: (0, 0))

    if features_resident:
        in_specs = [adj_spec,
                    _single_buffered((n_pad, f_pad), lambda i, k: (0, 0)),
                    inv_spec, w_spec]
        args = (adj_p, feat_p, inv_p, w12t)
        feat_hbm_bytes = n_pad * f_pad * cbytes
    else:
        in_specs = [adj_spec,
                    pl.BlockSpec((tile_n, f_pad), lambda i, k: (i, 0)),   # self rows
                    pl.BlockSpec((tile_k, f_pad), lambda i, k: (k, 0)),   # neighbor cols
                    inv_spec, w_spec]
        args = (adj_p, feat_p, feat_p, inv_p, w12t)
        feat_hbm_bytes = (1 + n_i) * n_pad * f_pad * cbytes   # rows once + cols per i-block

    cost = pl.CostEstimate(
        flops=2 * n_pad * n_pad * f_pad + 2 * n_pad * (2 * f_pad) * e_pad,
        transcendentals=0,
        bytes_accessed=(n_pad * n_pad                         # int8 adjacency mask
                        + feat_hbm_bytes
                        + 2 * f_pad * e_pad * cbytes
                        + n_pad * 4
                        + n_pad * e_pad * obytes),
    )

    fp = footprint(tile_n, tile_k, features_resident)
    vmem_limit = int(min(max(fp * 3 // 2 + (4 << 20), 32 << 20), 60 << 20))

    kernel = _make_kernel(tile_n, tile_k, features_resident, compute_dtype)

    out_t = pl.pallas_call(
        kernel,
        out_shape=jax.ShapeDtypeStruct((n_pad, e_pad), out_dtype),
        grid_spec=pltpu.PrefetchScalarGridSpec(
            num_scalar_prefetch=0,
            grid=grid,
            in_specs=in_specs,
            out_specs=pl.BlockSpec((tile_n, e_pad), lambda i, k: (i, 0)),
            scratch_shapes=[pltpu.VMEM((tile_n, f_pad), jnp.float32)],
        ),
        compiler_params=pltpu.CompilerParams(
            dimension_semantics=("parallel", "arbitrary"),
            vmem_limit_bytes=vmem_limit,
        ),
        cost_estimate=cost,
    )(*args)

    out = out_t[:N, :E]
    # [N, E] -> [E, N] to match PyTorch's relu(W @ combined.T).
    return out.T if transpose_output else out


def xavier_uniform(key, shape):
    fan_out, fan_in = shape
    bound = jnp.sqrt(6.0 / (fan_in + fan_out))
    return jax.random.uniform(key, shape, jnp.float32, -bound, bound)


if __name__ == "__main__":
    # Small shapes consistent with the module: N nodes, feat_dim, embed_dim.
    N = 8
    FEAT_DIM = 32
    EMBED_DIM = 32   # gcn=False -> weight is [embed_dim, 2*feat_dim]

    key = jax.random.PRNGKey(0)
    k_feat, k_adj, k_w = jax.random.split(key, 3)

    features = jax.random.normal(k_feat, (N, FEAT_DIM), dtype=jnp.float32)

    # Deterministic synthetic adjacency (no self loops); isolated nodes fall back to
    # their own features (mean over {self}).
    adj_raw = (jax.random.uniform(k_adj, (N, N)) > 0.5).astype(jnp.float32)
    adj_raw = adj_raw * (1.0 - jnp.eye(N, dtype=jnp.float32))
    deg0 = jnp.sum(adj_raw, axis=1, keepdims=True)
    adj_full = jnp.where(deg0 > 0, adj_raw, jnp.eye(N, dtype=jnp.float32))

    weight = xavier_uniform(k_w, (EMBED_DIM, 2 * FEAT_DIM))

    out = jax.block_until_ready(encoder_forward(adj_full, features, weight))
    assert out.shape == (EMBED_DIM, N)

    # Reference in plain JAX, mirroring the kernel's bf16-input / f32-accumulate math.
    q = lambda x: x.astype(jnp.bfloat16).astype(jnp.float32)
    feat_q, w_q = q(features), q(weight)
    deg = jnp.maximum(jnp.sum(adj_full, axis=1, keepdims=True), 1.0)
    neigh_q = q((adj_full @ feat_q) / deg)
    ref = jnp.maximum(w_q[:, :FEAT_DIM] @ feat_q.T + w_q[:, FEAT_DIM:] @ neigh_q.T, 0.0)

    assert jnp.allclose(out, ref, atol=3e-2, rtol=3e-2), float(jnp.max(jnp.abs(out - ref)))

    print("KERNEL_OK")
</pallas_src>

<mosaic_0001>
module attributes {stable_mosaic.version = 11 : i64} {
  func.func @kernel(%arg0: i32, %arg1: i32, %arg2: memref<128x128xi8, #tpu.memory_space<vmem>>, %arg3: memref<128x128xbf16, #tpu.memory_space<vmem>>, %arg4: memref<128x1xf32, #tpu.memory_space<vmem>>, %arg5: memref<256x128xbf16, #tpu.memory_space<vmem>>, %arg6: memref<128x128xf32, #tpu.memory_space<vmem>>, %arg7: memref<128x128xf32, #tpu.memory_space<vmem>>) attributes {dimension_semantics = [#tpu.dimension_semantics<parallel>, #tpu.dimension_semantics<arbitrary>], iteration_bounds = array<i64: 1, 1>, scalar_prefetch = 0 : i64, scratch_operands = 1 : i64, tpu.core_type = #tpu.core_type<tc>, window_params = [{transform_indices = @transform_0, window_bounds = array<i64: 128, 128>}, {pipeline_mode = #tpu.pipeline_mode<synchronous>, transform_indices = @transform_1, window_bounds = array<i64: 128, 128>}, {transform_indices = @transform_2, window_bounds = array<i64: 128, 1>}, {pipeline_mode = #tpu.pipeline_mode<synchronous>, transform_indices = @transform_3, window_bounds = array<i64: 256, 128>}, {transform_indices = @transform_4, window_bounds = array<i64: 128, 128>}]} {
    %c128_i32 = arith.constant 128 : i32
    %0 = arith.muli %arg1, %c128_i32 : i32
    %1 = tpu.assume_multiple %0, 128 : i32
    %2 = arith.index_cast %1 : i32 to index
    %c0 = arith.constant 0 : index
    %3 = vector.load %arg3[%2, %c0] : memref<128x128xbf16, #tpu.memory_space<vmem>>, vector<128x128xbf16>
    %c0_i32 = arith.constant 0 : i32
    %4 = arith.cmpi eq, %arg1, %c0_i32 : i32
    %5 = arith.extui %4 : i1 to i32
    %c0_i32_0 = arith.constant 0 : i32
    %6 = arith.cmpi ne, %5, %c0_i32_0 : i32
    scf.if %6 {
      %cst_9 = arith.constant 0.000000e+00 : f32
      %17 = vector.broadcast %cst_9 : f32 to vector<128x128xf32>
      %c0_10 = arith.constant 0 : index
      %c0_11 = arith.constant 0 : index
      %18 = vector.load %arg7[%c0_10, %c0_11] : memref<128x128xf32, #tpu.memory_space<vmem>>, vector<128x128xf32>
      tpu.vector_store %arg7[%c0_10, %c0_11], %17 {strides = array<i32>} : memref<128x128xf32, #tpu.memory_space<vmem>>, vector<128x128xf32>,
    } else {
    }
    %c0_1 = arith.constant 0 : index
    %c0_2 = arith.constant 0 : index
    %7 = vector.load %arg2[%c0_1, %c0_2] : memref<128x128xi8, #tpu.memory_space<vmem>>, vector<128x128xi8>
    %8 = arith.sitofp %7 : vector<128x128xi8> to vector<128x128xf32>
    %9 = arith.truncf %8 : vector<128x128xf32> to vector<128x128xbf16>
    %c0_3 = arith.constant 0 : index
    %c0_4 = arith.constant 0 : index
    %10 = vector.load %arg7[%c0_3, %c0_4] : memref<128x128xf32, #tpu.memory_space<vmem>>, vector<128x128xf32>
    %cst = arith.constant dense<0.000000e+00> : vector<128x128xf32>
    %11 = tpu.matmul %9, %3, %cst {dimension_numbers = #tpu.dot_dimension_numbers<[1], [0], [0], [1], [0, 0, 1, 1], [], []>} : vector<128x128xbf16>, vector<128x128xbf16>, vector<128x128xf32> -> vector<128x128xf32>
    %12 = arith.addf %10, %11 : vector<128x128xf32>
    %c0_5 = arith.constant 0 : index
    %c0_6 = arith.constant 0 : index
    %13 = vector.load %arg7[%c0_5, %c0_6] : memref<128x128xf32, #tpu.memory_space<vmem>>, vector<128x128xf32>
    tpu.vector_store %arg7[%c0_5, %c0_6], %12 {strides = array<i32>} : memref<128x128xf32, #tpu.memory_space<vmem>>, vector<128x128xf32>,
    %c0_i32_7 = arith.constant 0 : i32
    %14 = arith.cmpi eq, %arg1, %c0_i32_7 : i32
    %15 = arith.extui %14 : i1 to i32
    %c0_i32_8 = arith.constant 0 : i32
    %16 = arith.cmpi ne, %15, %c0_i32_8 : i32
    scf.if %16 {
      %c0_9 = arith.constant 0 : index
      %c0_10 = arith.constant 0 : index
      %17 = vector.load %arg7[%c0_9, %c0_10] : memref<128x128xf32, #tpu.memory_space<vmem>>, vector<128x128xf32>
      %c0_11 = arith.constant 0 : index
      %c0_12 = arith.constant 0 : index
      %18 = vector.load %arg4[%c0_11, %c0_12] : memref<128x1xf32, #tpu.memory_space<vmem>>, vector<128x1xf32>
      %19 = vector.broadcast %18 : vector<128x1xf32> to vector<128x128xf32>
      %20 = arith.mulf %17, %19 : vector<128x128xf32>
      %21 = arith.truncf %20 : vector<128x128xf32> to vector<128x128xbf16>
      %c128_i32_13 = arith.constant 128 : i32
      %22 = arith.muli %arg0, %c128_i32_13 : i32
      %23 = tpu.assume_multiple %22, 128 : i32
      %24 = arith.index_cast %23 : i32 to index
      %c0_14 = arith.constant 0 : index
      %25 = vector.load %arg3[%24, %c0_14] : memref<128x128xbf16, #tpu.memory_space<vmem>>, vector<128x128xbf16>
      %26 = tpu.concatenate %25, %21 in 1 : vector<128x128xbf16>, vector<128x128xbf16> -> vector<128x256xbf16>
      %c0_15 = arith.constant 0 : index
      %c0_16 = arith.constant 0 : index
      %27 = vector.load %arg5[%c0_15, %c0_16] : memref<256x128xbf16, #tpu.memory_space<vmem>>, vector<256x128xbf16>
      %cst_17 = arith.constant dense<0.000000e+00> : vector<128x128xf32>
      %28 = tpu.matmul %26, %27, %cst_17 {dimension_numbers = #tpu.dot_dimension_numbers<[1], [0], [0], [1], [0, 0, 1, 1], [], []>} : vector<128x256xbf16>, vector<256x128xbf16>, vector<128x128xf32> -> vector<128x128xf32>
      %cst_18 = arith.constant 0.000000e+00 : f32
      %29 = vector.broadcast %cst_18 : f32 to vector<128x128xf32>
      %30 = arith.maximumf %28, %29 : vector<128x128xf32>
      %c0_19 = arith.constant 0 : index
      %c0_20 = arith.constant 0 : index
      %31 = vector.load %arg6[%c0_19, %c0_20] : memref<128x128xf32, #tpu.memory_space<vmem>>, vector<128x128xf32>
      tpu.vector_store %arg6[%c0_19, %c0_20], %30 {strides = array<i32>} : memref<128x128xf32, #tpu.memory_space<vmem>>, vector<128x128xf32>,
    } else {
    }
    return
  }
  func.func @transform_0(%arg0: i32, %arg1: i32) -> (i32, i32) {
    %c0_i32 = arith.constant 0 : i32
    return %arg0, %arg1 : i32, i32
  }
  func.func @transform_1(%arg0: i32, %arg1: i32) -> (i32, i32) {
    %c0_i32 = arith.constant 0 : i32
    %c0_i32_0 = arith.constant 0 : i32
    %c0_i32_1 = arith.constant 0 : i32
    return %c0_i32, %c0_i32_0 : i32, i32
  }
  func.func @transform_2(%arg0: i32, %arg1: i32) -> (i32, i32) {
    %c0_i32 = arith.constant 0 : i32
    %c0_i32_0 = arith.constant 0 : i32
    return %arg0, %c0_i32 : i32, i32
  }
  func.func @transform_3(%arg0: i32, %arg1: i32) -> (i32, i32) {
    %c0_i32 = arith.constant 0 : i32
    %c0_i32_0 = arith.constant 0 : i32
    %c0_i32_1 = arith.constant 0 : i32
    return %c0_i32, %c0_i32_0 : i32, i32
  }
  func.func @transform_4(%arg0: i32, %arg1: i32) -> (i32, i32) {
    %c0_i32 = arith.constant 0 : i32
    %c0_i32_0 = arith.constant 0 : i32
    return %arg0, %c0_i32 : i32, i32
  }
}

</mosaic_0001>

<bundles_post_ra>
// kernel: tpu_custom_call.1
= control target key start
LH: loop header
LB: loop body
LE: loop exit
PB: predicated region body
PF: predicated region fallthrough
CT: control target
= control target key end

     0   :  { %9 = vsyncpa [#allocation4], 0  ;;  %s1255_s0 = inlined_call_operand.hbm [shape: s8[128,128], index: 0, kind: input, shape index: {}]   ;;  %s1256_s1 = inlined_call_operand.hbm [shape: bf16[128,128], index: 1, kind: input, shape index: {}]   ;;  %s1257_s2 = inlined_call_operand.vmem [shape: f32[128,1], index: 2, kind: input, shape index: {}]   ;;  %s1258_s3 = inlined_call_operand.vmem [shape: bf16[256,128], index: 3, kind: input, shape index: {}]   ;;  %s1259_s4 = inlined_call_operand.hbm [shape: f32[128,128], index: 4, kind: output, shape index: {}]  }
   0x1   :  { %10 = vsyncpa [#allocation7], 0 }
   0x2   :  { %11 = vsyncpa [#allocation5], 0  ;;  %s16_s17 = sshll.u32 %s1255_s0, 4  ;;  %s1099_s18 = smov [#allocation3]   ;;  %s17_s17 = int_to_ptr.hbm [resolvable:$true] %s16_s17 }
   0x3   :  { %s18_s19 = sshll.u32 %s1099_s18, 4  ;;  %s29_s22 = sshll.u32 %s1256_s1, 4  ;;  %s19_s19 = int_to_ptr.vmem [resolvable:$true] %s18_s19  ;;  %s30_s22 = int_to_ptr.hbm [resolvable:$true] %s29_s22 }
   0x4   :  { %s1100_s23 = smov 128   ;;  %s1101_s24 = smov 8  }
   0x5   :  { %24 = dma.hbm_to_vmem [thread:$0]  %s17_s17, 512, %s19_s19, [#allocation4], %s1100_s23, %s1100_s23, %s1101_s24  }
   0x6   :  { %s1102_s25 = smov [#allocation6]   ;;  %s1103_s27 = smov 64  }
   0x7   :  { %s31_s26 = sshll.u32 %s1102_s25, 4  ;;  %s1104_s0 = smov 4   ;;  %s32_s26 = int_to_ptr.vmem [resolvable:$true] %s31_s26 }
   0x8   :  { %37 = dma.hbm_to_vmem [thread:$0]  %s30_s22, 1024, %s32_s26, [#allocation7], %s1103_s27, %s1103_s27, %s1104_s0  }
   0x9   :  { %1093 = dma.done.wait [#allocation4], 512  }
   0xa   :  { %1094 = vsyncadd [#allocation4], 4294966784 }
   0xb   :  { %1095 = dma.done.wait [#allocation7], 1024  }
   0xc   :  { %1096 = vsyncadd [#allocation7], 4294966272  ;;  %v1105_v0 = vmov 0   ;;  %v961_v1 = vld [vmem:[#allocation6 + $0x38] sm:$0xff]  ;;  %v299_v2 = vld [vmem:[%s1257_s2] sm:$0xff]  ;;  %s808_s14 = sshll.u32 %s1259_s4, 4  ;;  %s809_s14 = int_to_ptr.hbm [resolvable:$true] %s808_s14 }
   0xd   :  { %1018 = vset.pattern.permute.xlu0 %v1105_v0  ;;  %1019 = vset.pattern.permute.xlu1 %v1105_v0  ;;  %v960_v3 = vld [vmem:[#allocation6 + $0x30] sm:$0xff]  ;;  %v959_v5 = vld [vmem:[#allocation6 + $0x28] sm:$0xff]  ;;  %v302_v7 = vld [vmem:[%s1257_s2 + $0x18] sm:$0xff] }
   0xe   :  { %1020 = vset.pattern.permute.xlu2 %v1105_v0  ;;  %317 = vperm.xlu0 %1018, %v299_v2   ;;  %v301_v4 = vld [vmem:[%s1257_s2 + $0x10] sm:$0xff]  ;;  %v300_v6 = vld [vmem:[%s1257_s2 + $0x8] sm:$0xff]  ;;  %v958_v8 = vld [vmem:[#allocation6 + $0x20] sm:$0xff] }
   0xf   :  { %199 = vmatpush.bf16.msra.mxu0 %v961_v1  ;;  %986 = vmatpush.bf16.msra.mxu3 %v961_v1  ;;  %v957_v9 = vld [vmem:[#allocation6 + $0x18] sm:$0xff]  ;;  %v305_v10 = vld [vmem:[%s1257_s2 + $0x30] sm:$0xff]  ;;  %v303_v12 = vld [vmem:[%s1257_s2 + $0x20] sm:$0xff] }
  0x10   :  { %327 = vperm.xlu1 %1019, %v301_v4   ;;  %v306_v11 = vld [vmem:[%s1257_s2 + $0x38] sm:$0xff]  ;;  %v956_v13 = vld [vmem:[#allocation6 + $0x10] sm:$0xff]  ;;  %v91_v14 = vld [vmem:[#allocation3] sm:$0xff]  ;;  %337 = vperm.xlu2 %1020, %v303_v12  }
  0x11   :  { %v94_v15 = vld [vmem:[#allocation3 + $0x18] sm:$0xff]  ;;  %v95_v16 = vunpack.c.0.s8 %v91_v14  ;;  %v96_v17 = vunpack.c.1.s8 %v91_v14  ;;  %v955_v20 = vld [vmem:[#allocation6 + $0x8] sm:$0xff]  ;;  %v311_v26 = vld [vmem:[%s1257_s2 + $0x60] sm:$0xff]  ;;  %v97_v33 = vunpack.c.2.s8 %v91_v14  ;;  %v98_v34 = vunpack.c.3.s8 %v91_v14 }
  0x12   :  { %v107_v18 = vunpack.c.0.s8 %v94_v15  ;;  %v108_v19 = vunpack.c.1.s8 %v94_v15  ;;  %v308_v21 = vld [vmem:[%s1257_s2 + $0x48] sm:$0xff]  ;;  %v954_v27 = vld [vmem:[#allocation6] sm:$0xff]  ;;  %v309_v30 = vld [vmem:[%s1257_s2 + $0x50] sm:$0xff]  ;;  %v109_v35 = vunpack.c.2.s8 %v94_v15  ;;  %v110_v36 = vunpack.c.3.s8 %v94_v15 }
  0x13   :  { %200 = vmatpush.bf16.msra.mxu0 %v960_v3  ;;  %987 = vmatpush.bf16.msra.mxu3 %v960_v3  ;;  %v111_v22 = vcvt.s32.f32 %v95_v16  ;;  %v112_v23 = vcvt.s32.f32 %v96_v17  ;;  %v310_v31 = vld [vmem:[%s1257_s2 + $0x58] sm:$0xff]  ;;  %v304_v32 = vld [vmem:[%s1257_s2 + $0x28] sm:$0xff]  ;;  %v307_v38 = vld [vmem:[%s1257_s2 + $0x40] sm:$0xff]  ;;  %v113_v39 = vcvt.s32.f32 %v97_v33  ;;  %v114_v40 = vcvt.s32.f32 %v98_v34 }
  0x14   :  { %v123_v24 = vcvt.s32.f32 %v107_v18  ;;  %v124_v25 = vcvt.s32.f32 %v108_v19  ;;  %v314_v37 = vld [vmem:[%s1257_s2 + $0x78] sm:$0xff]  ;;  %v125_v41 = vcvt.s32.f32 %v109_v35  ;;  %v126_v42 = vcvt.s32.f32 %v110_v36  ;;  %v312_v45 = vld [vmem:[%s1257_s2 + $0x68] sm:$0xff]  ;;  %v313_v52 = vld [vmem:[%s1257_s2 + $0x70] sm:$0xff] }
  0x15   :  { %v127_v28 = vpack.c.bf16 %v112_v23, %v111_v22  ;;  %v128_v43 = vpack.c.bf16 %v114_v40, %v113_v39  ;;  %v92_v46 = vld [vmem:[#allocation3 + $0x8] sm:$0xff]  ;;  %v93_v58 = vld [vmem:[#allocation3 + $0x10] sm:$0xff]  ;;  %v977_v59 = vld [vmem:[%s1258_s3 + $0x38] sm:$0xff] }
  0x16   :  { %322 = vperm.xlu0 %1018, %v300_v6   ;;  %v133_v29 = vpack.c.bf16 %v124_v25, %v123_v24  ;;  %v134_v44 = vpack.c.bf16 %v126_v42, %v125_v41  ;;  %v99_v47 = vunpack.c.0.s8 %v92_v46  ;;  %v100_v48 = vunpack.c.1.s8 %v92_v46  ;;  %v976_v62 = vld [vmem:[%s1258_s3 + $0x30] sm:$0xff]  ;;  %672 = vmatpush.bf16.msra.mxu1 %v977_v59  ;;  %v975_v1 = vld [vmem:[%s1258_s3 + $0x28] sm:$0xff]  ;;  %v974_v3 = vld [vmem:[%s1258_s3 + $0x20] sm:$0xff] }
  0x17   :  { %201 = vmatpush.bf16.msra.mxu0 %v959_v5  ;;  %988 = vmatpush.bf16.msra.mxu3 %v959_v5  ;;  %v101_v53 = vunpack.c.2.s8 %v92_v46  ;;  %v102_v54 = vunpack.c.3.s8 %v92_v46  ;;  %v103_v60 = vunpack.c.0.s8 %v93_v58  ;;  %v104_v61 = vunpack.c.1.s8 %v93_v58  ;;  %v973_v4 = vld [vmem:[%s1258_s3 + $0x18] sm:$0xff]  ;;  %v984_v14 = vld [vmem:[%s1258_s3 + $0x70] sm:$0xff]  ;;  %v983_v16 = vld [vmem:[%s1258_s3 + $0x68] sm:$0xff] }
  0x18   :  { %332 = vperm.xlu1 %1019, %v302_v7   ;;  %342 = vperm.xlu2 %1020, %v304_v32   ;;  %v115_v49 = vcvt.s32.f32 %v99_v47  ;;  %v116_v50 = vcvt.s32.f32 %v100_v48  ;;  %v105_v5 = vunpack.c.2.s8 %v93_v58  ;;  %v106_v6 = vunpack.c.3.s8 %v93_v58  ;;  %v972_v7 = vld [vmem:[%s1258_s3 + $0x10] sm:$0xff]  ;;  %v982_v17 = vld [vmem:[%s1258_s3 + $0x60] sm:$0xff]  ;;  %v981_v18 = vld [vmem:[%s1258_s3 + $0x58] sm:$0xff] }
  0x19   :  { %v117_v55 = vcvt.s32.f32 %v101_v53  ;;  %v118_v56 = vcvt.s32.f32 %v102_v54  ;;  %v119_v63 = vcvt.s32.f32 %v103_v60  ;;  %v120_v0 = vcvt.s32.f32 %v104_v61  ;;  %v968_v15 = vld [vmem:[#allocation6 + $0x30] sm:$0xff]  ;;  %v978_v24 = vld [vmem:[%s1258_s3 + $0x40] sm:$0xff] }
  0x1a   :  { %v129_v51 = vpack.c.bf16 %v116_v50, %v115_v49  ;;  %673 = vmatpush.bf16.msra.mxu1 %v976_v62  ;;  %v980_v19 = vld [vmem:[%s1258_s3 + $0x50] sm:$0xff]  ;;  %v962_v25 = vld [vmem:[#allocation6] sm:$0xff] }
  0x1b   :  { %202 = vmatpush.bf16.msra.mxu0 %v958_v8  ;;  %989 = vmatpush.bf16.msra.mxu3 %v958_v8  ;;  %v130_v57 = vpack.c.bf16 %v118_v56, %v117_v55  ;;  %v131_v2 = vpack.c.bf16 %v120_v0, %v119_v63  ;;  %v121_v8 = vcvt.s32.f32 %v105_v5  ;;  %v964_v48 = vld [vmem:[#allocation6 + $0x10] sm:$0xff]  ;;  %v965_v5 = vld [vmem:[#allocation6 + $0x18] sm:$0xff] }
  0x1e   :  { %347 = vperm.xlu0 %1018, %v305_v10   ;;  %674 = vmatpush.bf16.msra.mxu1 %v975_v1  ;;  %v971_v10 = vld [vmem:[%s1258_s3 + $0x8] sm:$0xff] }
  0x1f   :  { %203 = vmatpush.bf16.msra.mxu0 %v957_v9  ;;  %990 = vmatpush.bf16.msra.mxu3 %v957_v9  ;;  %v122_v9 = vcvt.s32.f32 %v106_v6 }
  0x20   :  { %352 = vperm.xlu1 %1019, %v306_v11   ;;  %357 = vperm.xlu2 %1020, %v307_v38   ;;  %v985_v11 = vld [vmem:[%s1258_s3 + $0x78] sm:$0xff] }
  0x21   :  { %v132_v12 = vpack.c.bf16 %v122_v9, %v121_v8  ;;  %721 = vmatpush.bf16.msra.mxu2 %v985_v11 }
  0x22   :  { %675 = vmatpush.bf16.msra.mxu1 %v974_v3 }
  0x23   :  { %204 = vmatpush.bf16.msra.mxu0 %v956_v13  ;;  %991 = vmatpush.bf16.msra.mxu3 %v956_v13  ;;  %v970_v13 = vld [vmem:[%s1258_s3] sm:$0xff] }
  0x25   :  { %722 = vmatpush.bf16.msra.mxu2 %v984_v14 }
  0x26   :  { %362 = vperm.xlu0 %1018, %v308_v21   ;;  %676 = vmatpush.bf16.msra.mxu1 %v973_v4  ;;  %v979_v21 = vld [vmem:[%s1258_s3 + $0x48] sm:$0xff]  ;;  %s1106_s3 = smov [#allocation8]  }
  0x27   :  { %205 = vmatpush.bf16.msra.mxu0 %v955_v20  ;;  %992 = vmatpush.bf16.msra.mxu3 %v955_v20  ;;  %v969_v20 = vld [vmem:[#allocation6 + $0x38] sm:$0xff]  ;;  %s806_s11 = sshll.u32 %s1106_s3, 4  ;;  %s807_s11 = int_to_ptr.vmem [resolvable:$true] %s806_s11 }
  0x28   :  { %377 = vperm.xlu1 %1019, %v311_v26   ;;  %382 = vperm.xlu2 %1020, %v312_v45  }
  0x29   :  { %723 = vmatpush.bf16.msra.mxu2 %v983_v16 }
  0x2a   :  { %677 = vmatpush.bf16.msra.mxu1 %v972_v7 }
  0x2b   :  { %206 = vmatpush.bf16.msra.mxu0 %v954_v27  ;;  %993 = vmatpush.bf16.msra.mxu3 %v954_v27 }
  0x2d   :  { %724 = vmatpush.bf16.msra.mxu2 %v982_v17 }
  0x2e   :  { %207 = vmatmul.bf16.vlgmr.msra.gmra.mxu0 %v127_v28  ;;  %237 = vmatmul.bf16.vlgmr.msra.gmra.mxu3 %v133_v29 }
  0x2f   :  { %367 = vperm.xlu0 %1018, %v309_v30   ;;  %994 = vmatpush.bf16.msrb.mxu3 %v977_v59  ;;  %v963_v30 = vld [vmem:[#allocation6 + $0x8] sm:$0xff] }
  0x30   :  { %372 = vperm.xlu1 %1019, %v310_v31   ;;  %387 = vperm.xlu2 %1020, %v313_v52  }
  0x31   :  { %678 = vmatpush.bf16.msra.mxu1 %v971_v10  ;;  %725 = vmatpush.bf16.msra.mxu2 %v981_v18 }
  0x33   :  { %995 = vmatpush.bf16.msrb.mxu3 %v976_v62 }
  0x35   :  { %679 = vmatpush.bf16.msra.mxu1 %v970_v13  ;;  %726 = vmatpush.bf16.msra.mxu2 %v980_v19 }
  0x37   :  { %392 = vperm.xlu0 %1018, %v314_v37   ;;  %996 = vmatpush.bf16.msrb.mxu3 %v975_v1 }
  0x38   :  { %680 = vmatmul.bf16.vlgmr.msra.gmra.mxu1 %v962_v25 }
  0x39   :  { %727 = vmatpush.bf16.msra.mxu2 %v979_v21 }
  0x3b   :  { %997 = vmatpush.bf16.msrb.mxu3 %v974_v3 }
  0x3d   :  { %728 = vmatpush.bf16.msra.mxu2 %v978_v24 }
  0x3e   :  { %212 = vmatmul.bf16.gmra.mxu0 %v128_v43  ;;  %242 = vmatmul.bf16.gmra.mxu3 %v134_v44 }
  0x3f   :  { %998 = vmatpush.bf16.msrb.mxu3 %v973_v4 }
  0x43   :  { %999 = vmatpush.bf16.msrb.mxu3 %v972_v7 }
  0x47   :  { %1000 = vmatpush.bf16.msrb.mxu3 %v971_v10 }
  0x48   :  { %685 = vmatmul.bf16.gmra.mxu1 %v963_v30 }
  0x4b   :  { %1001 = vmatpush.bf16.msrb.mxu3 %v970_v13 }
  0x4e   :  { %217 = vmatmul.bf16.gmra.mxu0 %v129_v51  ;;  %710 = vmatmul.bf16.vlgmr.msrb.gmra.mxu3 %v968_v15 }
  0x4f   :  { %1002 = vmatpush.bf16.msra.mxu3 %v985_v11 }
  0x53   :  { %1003 = vmatpush.bf16.msra.mxu3 %v984_v14 }
  0x57   :  { %1004 = vmatpush.bf16.msra.mxu3 %v983_v16 }
  0x58   :  { %690 = vmatmul.bf16.gmra.mxu1 %v964_v48 }
  0x5b   :  { %1005 = vmatpush.bf16.msra.mxu3 %v982_v17 }
  0x5e   :  { %222 = vmatmul.bf16.gmra.mxu0 %v130_v57  ;;  %715 = vmatmul.bf16.gmra.mxu3 %v969_v20 }
  0x5f   :  { %1006 = vmatpush.bf16.msra.mxu3 %v981_v18 }
  0x63   :  { %1007 = vmatpush.bf16.msra.mxu3 %v980_v19 }
  0x67   :  { %1008 = vmatpush.bf16.msra.mxu3 %v979_v21 }
  0x68   :  { %695 = vmatmul.bf16.gmra.mxu1 %v965_v5 }
  0x6a   :  { %v338_v26 = vpop.permute.xlu2 %337 }
  0x6b   :  { %1009 = vmatpush.bf16.msra.mxu3 %v978_v24 }
  0x6e   :  { %227 = vmatmul.bf16.gmra.mxu0 %v131_v2 }
  0x72   :  { %v343_v29 = vpop.permute.xlu2 %342 }
  0x7a   :  { %v1241_v34 = vpop.permute.xlu2 %357 }
  0x7e   :  { %232 = vmatmul.bf16.gmra.mxu0 %v132_v12 }
  0x80   :  { %v318_v23 = vpop.permute.xlu0 %317 }
  0x82   :  { %v328_v22 = vpop.permute.xlu1 %327  ;;  %v383_v44 = vpop.permute.xlu2 %382 }
  0x88   :  { %v323_v28 = vpop.permute.xlu0 %322 }
  0x8a   :  { %v333_v27 = vpop.permute.xlu1 %332  ;;  %v388_v60 = vpop.permute.xlu2 %387 }
  0x90   :  { %v1239_v32 = vpop.permute.xlu0 %347 }
  0x92   :  { %v1237_v31 = vpop.permute.xlu1 %352 }
  0x98   :  { %v1243_v42 = vpop.permute.xlu0 %362 }
  0x9a   :  { %v378_v37 = vpop.permute.xlu1 %377 }
  0xa1   :  { %v368_v56 = vpop.permute.xlu0 %367 }
  0xa9   :  { %v393_v6 = vpop.permute.xlu0 %392 }
  0xab   :  { %v208_v33 = vpop.f32.mrf.mxu0 }
  0xac   :  { %v395_v35 = vmul.f32 %v318_v23, %v208_v33 }
  0xae   :  { %v411_v39 = vpack.c.bf16 %v395_v35, %v395_v35 }
  0xb0   :  { %v512_v45 = vunpack.c.l.b16 %v411_v39 }
  0xb1   :  { %v238_v36 = vpop.f32.mrf.mxu3 }
  0xb2   :  { %v407_v40 = vmul.f32 %v378_v37, %v238_v36  ;;  %v967_v36 = vld [vmem:[#allocation6 + $0x28] sm:$0xff] }
  0xb3   :  { %v210_v38 = vpop.f32.mrf.mxu0 }
  0xb4   :  { %v396_v41 = vmul.f32 %v323_v28, %v210_v38  ;;  %v423_v46 = vpack.c.bf16 %v407_v40, %v407_v40 }
  0xb6   :  { %v412_v43 = vpack.c.bf16 %v396_v41, %v396_v41  ;;  %v524_v53 = vunpack.c.l.b16 %v423_v46 }
  0xb8   :  { %v513_v47 = vunpack.c.l.b16 %v412_v43 }
  0xb9   :  { %v240_v49 = vpop.f32.mrf.mxu3 }
  0xba   :  { %v408_v50 = vmul.f32 %v383_v44, %v240_v49  ;;  %v528_v51 = vpack.c.b16 %v513_v47, %v512_v45  ;;  %v373_v47 = vpop.permute.xlu1 %372 }
  0xbb   :  { %v213_v52 = vpop.f32.mrf.mxu0 }
  0xbc   :  { %v424_v54 = vpack.c.bf16 %v408_v50, %v408_v50  ;;  %729 = vmatmul.bf16.vlgmr.msra.gmra.mxu2 %v528_v51  ;;  %v397_v58 = vmul.f32 %v328_v22, %v213_v52  ;;  %v966_v22 = vld [vmem:[#allocation6 + $0x20] sm:$0xff] }
  0xbd   :  { %700 = vmatmul.bf16.gmra.mxu1 %v966_v22 }
  0xbe   :  { %v525_v55 = vunpack.c.l.b16 %v424_v54  ;;  %v413_v62 = vpack.c.bf16 %v397_v58, %v397_v58 }
  0xc0   :  { %v534_v57 = vpack.c.b16 %v525_v55, %v524_v53  ;;  %v514_v2 = vunpack.c.l.b16 %v413_v62 }
  0xc1   :  { %v243_v59 = vpop.f32.mrf.mxu3 }
  0xc2   :  { %759 = vmatmul.bf16.vlgmr.msra.gmra.mxu3 %v534_v57  ;;  %v409_v0 = vmul.f32 %v388_v60, %v243_v59  ;;  %v681_v57 = vpop.f32.mrf.mxu1 }
  0xc3   :  { %v215_v61 = vpop.f32.mrf.mxu0 }
  0xc4   :  { %v398_v63 = vmul.f32 %v333_v27, %v215_v61  ;;  %v425_v4 = vpack.c.bf16 %v409_v0, %v409_v0 }
  0xc6   :  { %v414_v1 = vpack.c.bf16 %v398_v63, %v398_v63  ;;  %v526_v11 = vunpack.c.l.b16 %v425_v4 }
  0xc8   :  { %v515_v3 = vunpack.c.l.b16 %v414_v1 }
  0xc9   :  { %v245_v7 = vpop.f32.mrf.mxu3 }
  0xca   :  { %v410_v8 = vmul.f32 %v393_v6, %v245_v7  ;;  %v529_v9 = vpack.c.b16 %v515_v3, %v514_v2  ;;  %v683_v58 = vpop.f32.mrf.mxu1 }
  0xcb   :  { %v218_v10 = vpop.f32.mrf.mxu0 }
  0xcc   :  { %v426_v12 = vpack.c.bf16 %v410_v8, %v410_v8  ;;  %734 = vmatmul.bf16.gmra.mxu2 %v529_v9  ;;  %v399_v14 = vmul.f32 %v338_v26, %v218_v10 }
  0xcd   :  { %705 = vmatmul.bf16.gmra.mxu1 %v967_v36 }
  0xce   :  { %v527_v13 = vunpack.c.l.b16 %v426_v12  ;;  %v415_v17 = vpack.c.bf16 %v399_v14, %v399_v14 }
  0xd0   :  { %v535_v15 = vpack.c.b16 %v527_v13, %v526_v11  ;;  %v516_v20 = vunpack.c.l.b16 %v415_v17 }
  0xd2   :  { %764 = vmatmul.bf16.gmra.mxu3 %v535_v15  ;;  %v686_v60 = vpop.f32.mrf.mxu1 }
  0xd3   :  { %v220_v16 = vpop.f32.mrf.mxu0 }
  0xd4   :  { %v400_v18 = vmul.f32 %v343_v29, %v220_v16 }
  0xd6   :  { %v416_v19 = vpack.c.bf16 %v400_v18, %v400_v18 }
  0xd8   :  { %v517_v21 = vunpack.c.l.b16 %v416_v19 }
  0xda   :  { %v530_v23 = vpack.c.b16 %v517_v21, %v516_v20  ;;  %v688_v2 = vpop.f32.mrf.mxu1 }
  0xdb   :  { %v223_v24 = vpop.f32.mrf.mxu0 }
  0xdc   :  { %739 = vmatmul.bf16.gmra.mxu2 %v530_v23  ;;  %v401_v25 = vmul.f32 %v1239_v32, %v223_v24 }
  0xde   :  { %v417_v28 = vpack.c.bf16 %v401_v25, %v401_v25 }
  0xe0   :  { %v518_v33 = vunpack.c.l.b16 %v417_v28 }
  0xe2   :  { %v691_v11 = vpop.f32.mrf.mxu1 }
  0xe3   :  { %v225_v27 = vpop.f32.mrf.mxu0 }
  0xe4   :  { %v402_v30 = vmul.f32 %v1237_v31, %v225_v27 }
  0xe6   :  { %v418_v26 = vpack.c.bf16 %v402_v30, %v402_v30 }
  0xe8   :  { %v519_v35 = vunpack.c.l.b16 %v418_v26 }
  0xea   :  { %v531_v37 = vpack.c.b16 %v519_v35, %v518_v33  ;;  %v693_v19 = vpop.f32.mrf.mxu1 }
  0xeb   :  { %v228_v29 = vpop.f32.mrf.mxu0 }
  0xec   :  { %744 = vmatmul.bf16.gmra.mxu2 %v531_v37  ;;  %v403_v38 = vmul.f32 %v1241_v34, %v228_v29  ;;  %v711_v34 = vpop.f32.mrf.mxu3 }
  0xee   :  { %v419_v40 = vpack.c.bf16 %v403_v38, %v403_v38 }
  0xf0   :  { %v520_v32 = vunpack.c.l.b16 %v419_v40 }
  0xf2   :  { %v696_v27 = vpop.f32.mrf.mxu1 }
  0xf3   :  { %v230_v39 = vpop.f32.mrf.mxu0 }
  0xf4   :  { %v404_v41 = vmul.f32 %v1243_v42, %v230_v39  ;;  %v713_v55 = vpop.f32.mrf.mxu3 }
  0xf6   :  { %v420_v43 = vpack.c.bf16 %v404_v41, %v404_v41 }
  0xf8   :  { %v521_v44 = vunpack.c.l.b16 %v420_v43 }
  0xfa   :  { %v532_v45 = vpack.c.b16 %v521_v44, %v520_v32  ;;  %v698_v33 = vpop.f32.mrf.mxu1 }
  0xfb   :  { %v233_v46 = vpop.f32.mrf.mxu0 }
  0xfc   :  { %749 = vmatmul.bf16.gmra.mxu2 %v532_v45  ;;  %v405_v31 = vmul.f32 %v368_v56, %v233_v46  ;;  %v716_v42 = vpop.f32.mrf.mxu3 }
  0xfe   :  { %v421_v49 = vpack.c.bf16 %v405_v31, %v405_v31 }
 0x100   :  { %v522_v52 = vunpack.c.l.b16 %v421_v49 }
 0x103   :  { %v235_v48 = vpop.f32.mrf.mxu0 }
 0x104   :  { %v406_v50 = vmul.f32 %v373_v47, %v235_v48  ;;  %v718_v59 = vpop.f32.mrf.mxu3 }
 0x106   :  { %v422_v51 = vpack.c.bf16 %v406_v50, %v406_v50 }
 0x108   :  { %v523_v53 = vunpack.c.l.b16 %v422_v51 }
 0x10a   :  { %v533_v54 = vpack.c.b16 %v523_v53, %v522_v52 }
 0x10c   :  { %754 = vmatmul.bf16.gmra.mxu2 %v533_v54 }
 0x13a   :  { %v701_v39 = vpop.f32.mrf.mxu1 }
 0x13f   :  { %v730_v61 = vpop.f32.mrf.mxu2 }
 0x140   :  { %v731_v62 = vadd.f32 %v730_v61, %v681_v57 }
 0x142   :  { %v770_v63 = vmax.f32 %v731_v62, 0.0  ;;  %v703_v44 = vpop.f32.mrf.mxu1 }
 0x144   :  { %786 = vst [vmem:[#allocation8] sm:$0xff] %v770_v63 }
 0x145   :  { %v760_v56 = vpop.f32.mrf.mxu3 }
 0x146   :  { %v761_v0 = vadd.f32 %v760_v56, %v711_v34 }
 0x147   :  { %v732_v1 = vpop.f32.mrf.mxu2 }
 0x148   :  { %v782_v3 = vmax.f32 %v761_v0, 0.0  ;;  %v733_v4 = vadd.f32 %v732_v1, %v683_v58 }
 0x14a   :  { %798 = vst [vmem:[#allocation8 + $0x60] sm:$0xff] %v782_v3  ;;  %v771_v5 = vmax.f32 %v733_v4, 0.0  ;;  %v706_v47 = vpop.f32.mrf.mxu1 }
 0x14c   :  { %787 = vst [vmem:[#allocation8 + $0x8] sm:$0xff] %v771_v5 }
 0x14d   :  { %v762_v6 = vpop.f32.mrf.mxu3 }
 0x14e   :  { %v763_v7 = vadd.f32 %v762_v6, %v713_v55 }
 0x14f   :  { %v735_v8 = vpop.f32.mrf.mxu2 }
 0x150   :  { %v783_v9 = vmax.f32 %v763_v7, 0.0  ;;  %v736_v10 = vadd.f32 %v735_v8, %v686_v60 }
 0x152   :  { %799 = vst [vmem:[#allocation8 + $0x68] sm:$0xff] %v783_v9  ;;  %v772_v12 = vmax.f32 %v736_v10, 0.0  ;;  %v708_v51 = vpop.f32.mrf.mxu1 }
 0x154   :  { %788 = vst [vmem:[#allocation8 + $0x10] sm:$0xff] %v772_v12 }
 0x155   :  { %v765_v13 = vpop.f32.mrf.mxu3 }
 0x156   :  { %v766_v14 = vadd.f32 %v765_v13, %v716_v42 }
 0x157   :  { %v737_v15 = vpop.f32.mrf.mxu2 }
 0x158   :  { %v784_v16 = vmax.f32 %v766_v14, 0.0  ;;  %v738_v17 = vadd.f32 %v737_v15, %v688_v2 }
 0x15a   :  { %800 = vst [vmem:[#allocation8 + $0x70] sm:$0xff] %v784_v16  ;;  %v773_v18 = vmax.f32 %v738_v17, 0.0 }
 0x15c   :  { %789 = vst [vmem:[#allocation8 + $0x18] sm:$0xff] %v773_v18 }
 0x15d   :  { %v767_v20 = vpop.f32.mrf.mxu3 }
 0x15e   :  { %v768_v21 = vadd.f32 %v767_v20, %v718_v59 }
 0x15f   :  { %v740_v22 = vpop.f32.mrf.mxu2 }
 0x160   :  { %v785_v23 = vmax.f32 %v768_v21, 0.0  ;;  %v741_v24 = vadd.f32 %v740_v22, %v691_v11 }
 0x162   :  { %801 = vst [vmem:[#allocation8 + $0x78] sm:$0xff] %v785_v23  ;;  %v774_v25 = vmax.f32 %v741_v24, 0.0 }
 0x164   :  { %790 = vst [vmem:[#allocation8 + $0x20] sm:$0xff] %v774_v25 }
 0x167   :  { %v742_v28 = vpop.f32.mrf.mxu2 }
 0x168   :  { %v743_v30 = vadd.f32 %v742_v28, %v693_v19 }
 0x16a   :  { %v775_v26 = vmax.f32 %v743_v30, 0.0 }
 0x16c   :  { %791 = vst [vmem:[#allocation8 + $0x28] sm:$0xff] %v775_v26 }
 0x16f   :  { %v745_v35 = vpop.f32.mrf.mxu2 }
 0x170   :  { %v746_v36 = vadd.f32 %v745_v35, %v696_v27 }
 0x172   :  { %v776_v37 = vmax.f32 %v746_v36, 0.0 }
 0x174   :  { %792 = vst [vmem:[#allocation8 + $0x30] sm:$0xff] %v776_v37 }
 0x177   :  { %v747_v29 = vpop.f32.mrf.mxu2 }
 0x178   :  { %v748_v38 = vadd.f32 %v747_v29, %v698_v33 }
 0x17a   :  { %v777_v40 = vmax.f32 %v748_v38, 0.0 }
 0x17c   :  { %793 = vst [vmem:[#allocation8 + $0x38] sm:$0xff] %v777_v40 }
 0x17f   :  { %v750_v41 = vpop.f32.mrf.mxu2 }
 0x180   :  { %v751_v43 = vadd.f32 %v750_v41, %v701_v39 }
 0x182   :  { %v778_v32 = vmax.f32 %v751_v43, 0.0 }
 0x184   :  { %794 = vst [vmem:[#allocation8 + $0x40] sm:$0xff] %v778_v32 }
 0x187   :  { %v752_v45 = vpop.f32.mrf.mxu2 }
 0x188   :  { %v753_v46 = vadd.f32 %v752_v45, %v703_v44 }
 0x18a   :  { %v779_v31 = vmax.f32 %v753_v46, 0.0 }
 0x18c   :  { %795 = vst [vmem:[#allocation8 + $0x48] sm:$0xff] %v779_v31 }
 0x18f   :  { %v755_v48 = vpop.f32.mrf.mxu2 }
 0x190   :  { %v756_v49 = vadd.f32 %v755_v48, %v706_v47 }
 0x192   :  { %v780_v50 = vmax.f32 %v756_v49, 0.0 }
 0x194   :  { %796 = vst [vmem:[#allocation8 + $0x50] sm:$0xff] %v780_v50 }
 0x197   :  { %v757_v52 = vpop.f32.mrf.mxu2 }
 0x198   :  { %v758_v53 = vadd.f32 %v757_v52, %v708_v51 }
 0x19a   :  { %v781_v54 = vmax.f32 %v758_v53, 0.0 }
 0x19c   :  { %797 = vst [vmem:[#allocation8 + $0x58] sm:$0xff] %v781_v54 }
 0x19d   :  { %814 = dma.vmem_to_hbm [thread:$0]  %s807_s11, 2048, %s809_s14, [#allocation5], %s1100_s23, %s1100_s23, %s1101_s24  }
 0x19e   :  { %1097 = dma.done.wait [#allocation5], 2048  }
 0x19f   :  { %1098 = vsyncadd [#allocation5], 4294965248 }
 0x1a0   :  { %819 = vsyncpa [#allocation4], 1 }
 0x1a1   :  { %820 = vsyncpa [#allocation7], 1 }
 0x1a2   :  { %821 = vsyncpa [#allocation5], 1 }

</bundles_post_ra>
